<compile_context>
chip_gen: v7x
topology: tpu7x:2x2x1
jax: 0.10.0
libtpu: 0.0.40
codegen_flags: <defaults>
</compile_context>

<pallas_src>
import functools

import jax
import jax.numpy as jnp
import numpy as np
from jax.experimental import pallas as pl
from jax.experimental.pallas import tpu as pltpu


def _round_up(x, m):
    return ((x + m - 1) // m) * m


def _cdiv(a, b):
    return -(-a // b)


def _largest_lane_tile(total, cap):
    """Largest multiple of 128 that divides `total` (a multiple of 128) and is <= cap."""
    n = total // 128
    for d in range(min(n, max(cap // 128, 1)), 0, -1):
        if n % d == 0:
            return 128 * d
    return 128


def _choose_tb(B, tile_rows):
    """Row-block size: multiple of 8 (or == B) that ideally divides B exactly."""
    if B <= tile_rows:
        return B
    start = (min(tile_rows, B) // 8) * 8
    for cand in range(start, 0, -8):
        if B % cand == 0:
            return cand
    return max(start, 8)   # fallback: partial (masked) last row block


def _t5_transform_kernel(tokens_ref, lengths_ref, out_ref, *,
                         max_seq_len, eos_idx, padding_idx, buf_len, tile_w):
    """Elementwise VPU select over one (TB, TW) output tile.

    out[b, col] = tokens[b, col]  if col <  trunc_b
                  eos_idx         if col == trunc_b
                  padding_idx     if col >  trunc_b
    with trunc_b = min(lengths[b], max_seq_len, buf_len)   (buf_len == L).
    """
    j = pl.program_id(1)
    toks = tokens_ref[...]                                    # (TB, TW) int32
    lens = lengths_ref[...]                                   # (TB, 1)  int32
    trunc = jnp.minimum(jnp.minimum(lens, jnp.int32(max_seq_len)),
                        jnp.int32(buf_len))                   # (TB, 1)
    # Tile-local truncation point: one subtract on the (TB, 1) vector instead of
    # adding j*tile_w to every output vreg.
    trunc_local = trunc - j * jnp.int32(tile_w)               # (TB, 1)
    col = jax.lax.broadcasted_iota(jnp.int32, out_ref.shape, 1)
    out_ref[...] = jnp.where(
        col < trunc_local, toks,
        jnp.where(col == trunc_local, jnp.int32(eos_idx), jnp.int32(padding_idx)))


def t5_transform(tokens_buf, lengths, *, max_seq_len, eos_idx, padding_idx,
                 tile_rows=None, tile_cols=None):
    """tokens_buf: (B, L) int32 token ids packed row-wise (content past
    lengths[b] is ignored).  lengths: (B,) int32 true sequence lengths.
    Returns (B, W_pad) int32 with W_pad = round_up(max_seq_len + 1, 128)."""
    tokens_buf = jnp.asarray(tokens_buf, jnp.int32)
    lengths = jnp.asarray(lengths, jnp.int32)
    B, L = tokens_buf.shape

    out_w = _round_up(max_seq_len + 1, 128)     # static, lane-dense output width

    kind = ""
    try:
        kind = jax.devices()[0].device_kind.lower()
    except Exception:
        pass
    is_v5e = ("v5 lite" in kind) or ("v5e" in kind) or ("v5litepod" in kind)
    is_v7 = "v7" in kind

    if tile_rows is None:
        tile_rows = 256
    if tile_cols is None:
        # ~2 MiB int32 blocks on v5e (16 MiB scoped-VMEM default),
        # ~4 MiB blocks on v6e / v7x (32 MiB scoped default).
        tile_cols = 2048 if is_v5e else 4096

    tb = _choose_tb(B, tile_rows)
    tw = _largest_lane_tile(out_w, min(tile_cols, out_w))   # tw divides out_w

    # v7x has two TensorCores per chip: expose >=2 blocks along a 'parallel'
    # grid axis so both cores stream HBM.
    if is_v7:
        if _cdiv(B, tb) * (out_w // tw) < 2 and B >= 16:
            tb = _round_up(_cdiv(B, 2), 8)
        if _cdiv(B, tb) * (out_w // tw) < 2 and out_w >= 256:
            tw = _largest_lane_tile(out_w, out_w // 2)

    grid = (_cdiv(B, tb), out_w // tw)          # exact: no partial column tiles
    n_tok_blocks = max(1, _cdiv(L, tw))

    if n_tok_blocks == 1:
        # Single (possibly partial) token block, reused across every column
        # tile: DMA issued once per row block, skipped afterwards.
        tok_map = lambda i, j: (i, 0)
    else:
        last_tok = n_tok_blocks - 1
        # Column tiles past the end of the id buffer re-read the last token
        # block (same block index -> DMA skipped); lanes past L are garbage in
        # the partial block and are fully masked by col < trunc.
        tok_map = lambda i, j: (i, jnp.minimum(j, last_tok))

    kernel = functools.partial(
        _t5_transform_kernel, max_seq_len=max_seq_len, eos_idx=eos_idx,
        padding_idx=padding_idx, buf_len=L, tile_w=tw)

    return pl.pallas_call(
        kernel,
        out_shape=jax.ShapeDtypeStruct((B, out_w), jnp.int32),
        grid=grid,
        in_specs=[
            pl.BlockSpec((tb, tw), tok_map),
            # Per-row lengths ride along as a skinny (TB, 1) tile, constant in j
            # (reused across the whole column sweep).
            pl.BlockSpec((tb, 1), lambda i, j: (i, 0)),
        ],
        out_specs=pl.BlockSpec((tb, tw), lambda i, j: (i, j)),
        compiler_params=pltpu.CompilerParams(
            dimension_semantics=("parallel", "parallel")),
    )(tokens_buf, lengths.reshape(B, 1))


def _reference(token_lists, *, max_seq_len, eos_idx, padding_idx, width):
    """Pure-python reference of Truncate -> AddToken(end) -> to_tensor(pad),
    padded out to the kernel's static lane-dense width."""
    seqs = [list(t[:max_seq_len]) + [eos_idx] for t in token_lists]
    return np.array([s + [padding_idx] * (width - len(s)) for s in seqs],
                    dtype=np.int32)


if __name__ == "__main__":
    # TODO(synk): sentencepiece EncodeAsIds/DecodeIds (string processing) has no
    # Pallas equivalent; deterministic synthetic token ids stand in for it.
    key = jax.random.PRNGKey(0)
    k0, k1, k2 = jax.random.split(key, 3)
    eos_idx, padding_idx = 1, 0

    # --- Small case (matches the module docstring scale; tiny partial token block). ---
    max_seq_len = 10
    B, L = 2, 12
    lengths = np.array([12, 5], dtype=np.int32)   # "hello world", "attention ..."
    tokens_buf = jax.random.randint(k0, (B, L), 2, 32000, dtype=jnp.int32)

    out = jax.block_until_ready(
        t5_transform(tokens_buf, lengths, max_seq_len=max_seq_len,
                     eos_idx=eos_idx, padding_idx=padding_idx))
    tok_np = np.asarray(tokens_buf)
    token_lists = [tok_np[b, :int(lengths[b])].tolist() for b in range(B)]
    ref = _reference(token_lists, max_seq_len=max_seq_len, eos_idx=eos_idx,
                     padding_idx=padding_idx, width=out.shape[1])
    np.testing.assert_array_equal(np.asarray(out), ref)

    # --- Token buffer narrower than the output width (single wide partial token block). ---
    max_seq_len2 = 700
    B2, L2 = 16, 640
    lengths2 = np.array([640, 1, 5, 640, 128, 512, 300, 77,
                         639, 2, 640, 256, 384, 63, 500, 100], dtype=np.int32)
    tokens_buf2 = jax.random.randint(k1, (B2, L2), 2, 32000, dtype=jnp.int32)
    out2 = jax.block_until_ready(
        t5_transform(tokens_buf2, lengths2, max_seq_len=max_seq_len2,
                     eos_idx=eos_idx, padding_idx=padding_idx))
    tok_np2 = np.asarray(tokens_buf2)
    token_lists2 = [tok_np2[b, :int(lengths2[b])].tolist() for b in range(B2)]
    ref2 = _reference(token_lists2, max_seq_len=max_seq_len2, eos_idx=eos_idx,
                      padding_idx=padding_idx, width=out2.shape[1])
    np.testing.assert_array_equal(np.asarray(out2), ref2)

    # --- Multi column-tile case (clamped token blocks + partial last token block,
    #     eos exactly on a tile boundary, empty sequence). ---
    max_seq_len3 = 1000
    B3, L3 = 8, 300
    lengths3 = np.array([300, 0, 7, 256, 129, 300, 64, 200], dtype=np.int32)
    tokens_buf3 = jax.random.randint(k2, (B3, L3), 2, 32000, dtype=jnp.int32)
    out3 = jax.block_until_ready(
        t5_transform(tokens_buf3, lengths3, max_seq_len=max_seq_len3,
                     eos_idx=eos_idx, padding_idx=padding_idx, tile_cols=256))
    tok_np3 = np.asarray(tokens_buf3)
    token_lists3 = [tok_np3[b, :int(lengths3[b])].tolist() for b in range(B3)]
    ref3 = _reference(token_lists3, max_seq_len=max_seq_len3, eos_idx=eos_idx,
                      padding_idx=padding_idx, width=out3.shape[1])
    np.testing.assert_array_equal(np.asarray(out3), ref3)

    print("KERNEL_OK")
</pallas_src>

<mosaic_0001>
module attributes {stable_mosaic.version = 11 : i64} {
  func.func @_t5_transform_kernel(%arg0: i32, %arg1: i32, %arg2: memref<2x128xi32, #tpu.memory_space<vmem>>, %arg3: memref<2x1xi32, #tpu.memory_space<vmem>>, %arg4: memref<2x128xi32, #tpu.memory_space<vmem>>) attributes {dimension_semantics = [#tpu.dimension_semantics<parallel>, #tpu.dimension_semantics<parallel>], iteration_bounds = array<i64: 1, 1>, scalar_prefetch = 0 : i64, scratch_operands = 0 : i64, tpu.core_type = #tpu.core_type<tc>, window_params = [{transform_indices = @transform_0, window_bounds = array<i64: 2, 128>}, {transform_indices = @transform_1, window_bounds = array<i64: 2, 1>}, {transform_indices = @transform_2, window_bounds = array<i64: 2, 128>}]} {
    %c0 = arith.constant 0 : index
    %c0_0 = arith.constant 0 : index
    %0 = vector.load %arg2[%c0, %c0_0] : memref<2x128xi32, #tpu.memory_space<vmem>>, vector<2x128xi32>
    %c0_1 = arith.constant 0 : index
    %c0_2 = arith.constant 0 : index
    %1 = vector.load %arg3[%c0_1, %c0_2] : memref<2x1xi32, #tpu.memory_space<vmem>>, vector<2x1xi32>
    %c10_i32 = arith.constant 10 : i32
    %2 = vector.broadcast %c10_i32 : i32 to vector<2x1xi32>
    %3 = arith.minsi %1, %2 : vector<2x1xi32>
    %c12_i32 = arith.constant 12 : i32
    %4 = vector.broadcast %c12_i32 : i32 to vector<2x1xi32>
    %5 = arith.minsi %3, %4 : vector<2x1xi32>
    %c128_i32 = arith.constant 128 : i32
    %6 = arith.muli %arg1, %c128_i32 : i32
    %7 = vector.broadcast %6 : i32 to vector<2x1xi32>
    %8 = arith.subi %5, %7 : vector<2x1xi32>
    %9 = tpu.iota {dimensions = array<i32: 1>} : vector<2x128xi32>
    %10 = vector.broadcast %8 : vector<2x1xi32> to vector<2x128xi32>
    %11 = arith.cmpi slt, %9, %10 : vector<2x128xi32>
    %12 = vector.broadcast %8 : vector<2x1xi32> to vector<2x128xi32>
    %13 = arith.cmpi eq, %9, %12 : vector<2x128xi32>
    %c1_i32 = arith.constant 1 : i32
    %c0_i32 = arith.constant 0 : i32
    %14 = vector.broadcast %c1_i32 : i32 to vector<2x128xi32>
    %15 = vector.broadcast %c0_i32 : i32 to vector<2x128xi32>
    %16 = arith.select %13, %14, %15 : vector<2x128xi1>, vector<2x128xi32>
    %17 = arith.select %11, %0, %16 : vector<2x128xi1>, vector<2x128xi32>
    %c0_3 = arith.constant 0 : index
    %c0_4 = arith.constant 0 : index
    %18 = vector.load %arg4[%c0_3, %c0_4] : memref<2x128xi32, #tpu.memory_space<vmem>>, vector<2x128xi32>
    tpu.vector_store %arg4[%c0_3, %c0_4], %17 {strides = array<i32>} : memref<2x128xi32, #tpu.memory_space<vmem>>, vector<2x128xi32>,
    return
  }
  func.func @transform_0(%arg0: i32, %arg1: i32) -> (i32, i32) {
    %c0_i32 = arith.constant 0 : i32
    %c0_i32_0 = arith.constant 0 : i32
    return %arg0, %c0_i32 : i32, i32
  }
  func.func @transform_1(%arg0: i32, %arg1: i32) -> (i32, i32) {
    %c0_i32 = arith.constant 0 : i32
    %c0_i32_0 = arith.constant 0 : i32
    return %arg0, %c0_i32 : i32, i32
  }
  func.func @transform_2(%arg0: i32, %arg1: i32) -> (i32, i32) {
    %c0_i32 = arith.constant 0 : i32
    return %arg0, %arg1 : i32, i32
  }
}

</mosaic_0001>

<bundles_post_ra>
// kernel: tpu_custom_call.1
= control target key start
LH: loop header
LB: loop body
LE: loop exit
PB: predicated region body
PF: predicated region fallthrough
CT: control target
= control target key end

     0   :  { %s107_s0 = inlined_call_operand.vmem [shape: s32[2,12], index: 0, kind: input, shape index: {}]   ;;  %s108_s1 = inlined_call_operand.vmem [shape: s32[2,1], index: 1, kind: input, shape index: {}]   ;;  %s109_s2 = inlined_call_operand.hbm [shape: s32[2,128], index: 2, kind: output, shape index: {}]  }
   0x1   :  { %v13_v0 = vld [vmem:[%s108_s1] sm:$0x3] }
   0x2   :  { %7 = vsyncpa [#allocation3], 0  ;;  %v72_v1 = vmov 0   ;;  %vm14_vm0 = vcmp.lt.s32.totalorder %v13_v0, 10  ;;  %v21_v4 = vlaneseq  ;;  %s73_s11 = smov [#allocation2]  }
   0x3   :  { %47 = vset.pattern.permute.xlu0 %v72_v1  ;;  %v15_v2 = vsel %vm14_vm0, %v13_v0, 10  ;;  %s37_s12 = sshll.u32 %s73_s11, 4  ;;  %v12_v7 = vld [vmem:[%s107_s0] sm:$0x3]  ;;  %s38_s12 = int_to_ptr.vmem [resolvable:$true] %s37_s12 }
   0x4   :  { %vm16_vm1 = vcmp.lt.s32.totalorder %v15_v2, 12  ;;  %v22_v5 = vand.u32 127, %v21_v4  ;;  %s48_s1 = scalar_lea.vmem %s38_s12, 32  ;;  %p53_p1 = scmp.lt.s32.totalorder %s38_s12, %s38_s12 }
   0x5   :  { %v17_v3 = vsel %vm16_vm1, %v15_v2, 12  ;;  %p49_p0 = scmp.ne.s32.totalorder %s38_s12, %s48_s1  ;;  %p54_p2 = scmp.lt.s32.totalorder %s48_s1, %s48_s1 }
   0x6   :  { %24 = vperm.xlu0 %47, %v17_v3  }
   0x7   :  { %p55_p3 = por %p54_p2, %p53_p1 }
   0x9   :  { %p56_p4 = pnand %p55_p3, %p49_p0 }
  0x85   :  { %v25_v6 = vpop.permute.xlu0 %24 }
  0x86   :  { %vm26_vm2 = vcmp.lt.s32.totalorder %v22_v5, %v25_v6  ;;  %vm27_vm3 = vcmp.eq.s32.totalorder %v22_v5, %v25_v6 }
  0x87   :  { %v28_v8 = vsel %vm27_vm3, 1, %v72_v1 }
  0x88   :  { %v29_v9 = vsel %vm26_vm2, %v12_v7, %v28_v8 }
  0x89   :  { %30 = vst [vmem:[#allocation2] sm:$0x3] %v29_v9 }
  0x8a   :  { %59 = shalt.err (!%p56_p4)
}
  0x8b   :  { %s60_s17 = scalar_lea.hbm %s109_s2, 32 }
  0x8c   :  { %p61_p5 = scmp.ne.s32.totalorder %s109_s2, %s60_s17  ;;  %p64_p6 = scmp.lt.u32.totalorder %s60_s17, %s109_s2 }
  0x8e   :  { %p66_p7 = pnand %p64_p6, %p61_p5 }
  0x90   :  { %69 = shalt.err (!%p66_p7)
}
  0x91   :  { %40 = dma.vmem_to_hbm [thread:$0]  %s38_s12, 32, %s109_s2, [#allocation3]  }
  0x92   :  { %70 = dma.done.wait [#allocation3], 32  }
  0x93   :  { %71 = vsyncadd [#allocation3], 4294967264 }
  0x94   :  { %44 = vsyncpa [#allocation3], 1 }

</bundles_post_ra>
